<compile_context>
chip_gen: v5e
topology: v5e:2x2
jax: 0.10.0
libtpu: 0.0.40
codegen_flags: <defaults>
</compile_context>

<pallas_src>
import jax
import jax.numpy as jnp
from jax.experimental import pallas as pl
from jax.experimental.pallas import tpu as pltpu


def _round_up(x: int, m: int) -> int:
    return ((x + m - 1) // m) * m


def decoder_kernel(x_ref, w_ref, b_ref, o_ref):
    # x_ref: (TN, C, HW)  native-layout activation tile (HW on the lane axis)
    # w_ref: (C, Kp)      Linear weight^T, pre-scaled by 1/(H*W), bf16, resident
    # b_ref: (1, Kp)      bias, K padded to lane width, f32, resident
    # o_ref: (1, TN, Kp)  lane-dense f32 output tile
    #
    # Global sum-pool over the HW lane axis (XLU); widen to f32 inside the
    # reduction so no whole-tile f32 temporary is materialized.
    pooled = jnp.sum(x_ref[...], axis=-1, dtype=jnp.float32)          # (TN, C)
    # bf16 x bf16 -> f32 on the MXU (native path); 1/(H*W) already folded into
    # the weight, so this is a pure sum-pool + dot.
    out = jnp.dot(pooled.astype(w_ref.dtype), w_ref[...],
                  preferred_element_type=jnp.float32)                  # (TN, Kp)
    o_ref[...] = (out + b_ref[...])[None]                              # (1, TN, Kp)


def resnet_decoder(x_nchw, weight, bias, *, batch_tile=32,
                   w_dtype=jnp.bfloat16):
    """Forward of ResNetDecoder: AdaptiveAvgPool2d((1,1)) -> flatten -> Linear.

    x_nchw : (N, C, H, W)  activation from the encoder (streamed in its native
                           dtype/layout -- no extra HBM pass in the wrapper)
    weight : (n_classes, C)   (PyTorch nn.Linear layout)
    bias   : (n_classes,)
    returns: (N, n_classes) float32

    batch_tile guidance at real ResNet scale (C=2048, HW=49, f32 activations):
    v5e ~16, v6e ~32-64, v7x ~32 (double these if the encoder emits bf16).
    """
    n, c, h, w = x_nchw.shape
    k = weight.shape[0]
    hw = h * w

    # Native layout: (N, C, H*W) is a free, contiguous reshape of NCHW.
    x_ncs = x_nchw.reshape(n, c, hw)
    x_item = jnp.dtype(x_ncs.dtype).itemsize

    # Fold 1/(H*W) into the tiny weight (before the bf16 cast), transpose to
    # (C, K) and pad K to a lane-dense multiple of 128. Bias stays f32.
    kp = _round_up(k, 128)
    w_t = (weight.astype(jnp.float32).T / float(hw)).astype(w_dtype)   # (C, K)
    w_t = jnp.pad(w_t, ((0, 0), (0, kp - k)))                          # (C, Kp)
    b2 = jnp.pad(bias.astype(jnp.float32), (0, kp - k)).reshape(1, kp)
    w_item = jnp.dtype(w_t.dtype).itemsize

    # Batch tiling: keep >=2 grid steps whenever N>=2 (both v7x TCs busy and
    # DMA/compute overlap from double-buffering), capped by batch_tile for
    # VMEM. tn only appears as a leading block dim for x and as a full output
    # dim, so it needs no (8,128) alignment.
    batch_tile = max(1, int(batch_tile))
    tn = max(1, min(batch_tile, pl.cdiv(n, 2)))
    grid_n = pl.cdiv(n, tn)

    # Explicit VMEM budget from the chosen tile (double-buffered, with layout
    # padding and headroom), clamped to [32 MiB, 64 MiB] so it is a valid
    # scoped limit on v5e/v6e/v7x.
    # NOTE: the weight/bias are resident (constant index maps); at real scale
    # they could additionally be single-buffered via pipeline_mode=pl.Buffered(1).
    x_tile = tn * _round_up(c, 16) * _round_up(hw, 128) * x_item
    w_tile = _round_up(c, 16) * kp * w_item
    b_tile = 8 * kp * 4
    o_tile = _round_up(tn, 8) * kp * 4
    working = 2 * (x_tile + w_tile + b_tile + o_tile)
    vmem_limit = int(min(max(2 * working + (4 << 20), 32 << 20), 64 << 20))

    cost = pl.CostEstimate(
        flops=int(2 * n * c * kp + n * c * hw),
        transcendentals=0,
        bytes_accessed=int(n * c * hw * x_item + c * kp * w_item
                           + kp * 4 + grid_n * tn * kp * 4),
    )

    # Last (partial) x block reads past N are garbage but only influence their
    # own output rows, which live past row n-1 of the padded output slab and
    # are sliced off below (verified boundary-block semantics).
    out = pl.pallas_call(
        decoder_kernel,
        out_shape=jax.ShapeDtypeStruct((grid_n, tn, kp), jnp.float32),
        grid_spec=pltpu.PrefetchScalarGridSpec(
            num_scalar_prefetch=0,
            grid=(grid_n,),
            in_specs=[
                pl.BlockSpec((tn, c, hw), lambda i: (i, 0, 0)),   # x: tiled over N
                pl.BlockSpec((c, kp), lambda i: (0, 0)),          # W^T: resident
                pl.BlockSpec((1, kp), lambda i: (0, 0)),          # bias: resident
            ],
            out_specs=pl.BlockSpec((1, tn, kp), lambda i: (i, 0, 0)),
        ),
        compiler_params=pltpu.CompilerParams(
            dimension_semantics=("parallel",),   # shard batch across v7x TCs
            vmem_limit_bytes=vmem_limit,
        ),
        cost_estimate=cost,
    )(x_ncs, w_t, b2)

    return out.reshape(grid_n * tn, kp)[:n, :k]


if __name__ == "__main__":
    # Small shapes consistent with the module's decoder: batch=2, channels=4,
    # spatial=16x16, n_classes=8.
    N, C, H, W, K = 2, 4, 16, 16, 8

    key = jax.random.PRNGKey(0)
    kx, kw, kb = jax.random.split(key, 3)

    x = jax.random.normal(kx, (N, C, H, W), dtype=jnp.float32)
    bound = 1.0 / (C ** 0.5)
    weight = jax.random.uniform(kw, (K, C), minval=-bound, maxval=bound,
                                dtype=jnp.float32)
    bias = jax.random.uniform(kb, (K,), minval=-bound, maxval=bound,
                              dtype=jnp.float32)

    out = resnet_decoder(x, weight, bias)
    out = jax.block_until_ready(out)

    # Reference (same semantics as the PyTorch forward). The kernel keeps the
    # activation and accumulation in f32; only the tiny weight / pooled sums
    # pass through bf16, so a loose tolerance vs the full-f32 reference holds.
    ref = jnp.mean(x, axis=(2, 3)) @ weight.T + bias

    assert out.shape == (N, K)
    assert jnp.allclose(out, ref, atol=2e-2, rtol=2e-2), (
        f"max abs err {jnp.max(jnp.abs(out - ref))}")

    print("KERNEL_OK")
</pallas_src>

<mosaic_0001>
module attributes {stable_mosaic.version = 11 : i64} {
  func.func @decoder_kernel(%arg0: i32, %arg1: memref<1x4x256xf32, #tpu.memory_space<vmem>>, %arg2: memref<4x128xbf16, #tpu.memory_space<vmem>>, %arg3: memref<1x128xf32, #tpu.memory_space<vmem>>, %arg4: memref<1x1x128xf32, #tpu.memory_space<vmem>>) attributes {dimension_semantics = [#tpu.dimension_semantics<parallel>], iteration_bounds = array<i64: 2>, scalar_prefetch = 0 : i64, scratch_operands = 0 : i64, tpu.core_type = #tpu.core_type<tc>, window_params = [{transform_indices = @transform_0, window_bounds = array<i64: 1, 4, 256>}, {pipeline_mode = #tpu.pipeline_mode<synchronous>, transform_indices = @transform_1, window_bounds = array<i64: 4, 128>}, {pipeline_mode = #tpu.pipeline_mode<synchronous>, transform_indices = @transform_2, window_bounds = array<i64: 1, 128>}, {transform_indices = @transform_3, window_bounds = array<i64: 1, 1, 128>}]} {
    %c0 = arith.constant 0 : index
    %c0_0 = arith.constant 0 : index
    %c0_1 = arith.constant 0 : index
    %0 = vector.load %arg1[%c0, %c0_0, %c0_1] : memref<1x4x256xf32, #tpu.memory_space<vmem>>, vector<1x4x256xf32>
    %cst = arith.constant dense<0.000000e+00> : vector<1x4xf32>
    %1 = vector.multi_reduction <add>, %0, %cst [2] : vector<1x4x256xf32> to vector<1x4xf32>
    %2 = arith.truncf %1 : vector<1x4xf32> to vector<1x4xbf16>
    %c0_2 = arith.constant 0 : index
    %c0_3 = arith.constant 0 : index
    %3 = vector.load %arg2[%c0_2, %c0_3] : memref<4x128xbf16, #tpu.memory_space<vmem>>, vector<4x128xbf16>
    %cst_4 = arith.constant dense<0.000000e+00> : vector<1x128xf32>
    %4 = tpu.matmul %2, %3, %cst_4 {dimension_numbers = #tpu.dot_dimension_numbers<[1], [0], [0], [1], [0, 0, 1, 1], [], []>} : vector<1x4xbf16>, vector<4x128xbf16>, vector<1x128xf32> -> vector<1x128xf32>
    %c0_5 = arith.constant 0 : index
    %c0_6 = arith.constant 0 : index
    %5 = vector.load %arg3[%c0_5, %c0_6] : memref<1x128xf32, #tpu.memory_space<vmem>>, vector<1x128xf32>
    %6 = arith.addf %4, %5 : vector<1x128xf32>
    %7 = vector.shape_cast %6 : vector<1x128xf32> to vector<1x1x128xf32>
    %c0_7 = arith.constant 0 : index
    %c0_8 = arith.constant 0 : index
    %c0_9 = arith.constant 0 : index
    %8 = vector.load %arg4[%c0_7, %c0_8, %c0_9] : memref<1x1x128xf32, #tpu.memory_space<vmem>>, vector<1x1x128xf32>
    tpu.vector_store %arg4[%c0_7, %c0_8, %c0_9], %7 {strides = array<i32>} : memref<1x1x128xf32, #tpu.memory_space<vmem>>, vector<1x1x128xf32>,
    return
  }
  func.func @transform_0(%arg0: i32) -> (i32, i32, i32) {
    %c0_i32 = arith.constant 0 : i32
    %c0_i32_0 = arith.constant 0 : i32
    %c0_i32_1 = arith.constant 0 : i32
    return %arg0, %c0_i32, %c0_i32_0 : i32, i32, i32
  }
  func.func @transform_1(%arg0: i32) -> (i32, i32) {
    %c0_i32 = arith.constant 0 : i32
    %c0_i32_0 = arith.constant 0 : i32
    %c0_i32_1 = arith.constant 0 : i32
    return %c0_i32, %c0_i32_0 : i32, i32
  }
  func.func @transform_2(%arg0: i32) -> (i32, i32) {
    %c0_i32 = arith.constant 0 : i32
    %c0_i32_0 = arith.constant 0 : i32
    %c0_i32_1 = arith.constant 0 : i32
    return %c0_i32, %c0_i32_0 : i32, i32
  }
  func.func @transform_3(%arg0: i32) -> (i32, i32, i32) {
    %c0_i32 = arith.constant 0 : i32
    %c0_i32_0 = arith.constant 0 : i32
    %c0_i32_1 = arith.constant 0 : i32
    return %arg0, %c0_i32, %c0_i32_0 : i32, i32, i32
  }
}

</mosaic_0001>

<bundles_post_ra>
// kernel: tpu_custom_call.1
= control target key start
LH: loop header
LB: loop body
LE: loop exit
PB: predicated region body
PF: predicated region fallthrough
CT: control target
= control target key end

     0   :  { %8 = vsyncpa [#allocation3], 0  ;;  %s703_s0 = inlined_call_operand.hbm [shape: f32[2,4,256], index: 0, kind: input, shape index: {}]   ;;  %s704_s1 = inlined_call_operand.hbm [shape: bf16[4,128], index: 1, kind: input, shape index: {}]   ;;  %s705_s2 = inlined_call_operand.vmem [shape: f32[1,128], index: 2, kind: input, shape index: {}]   ;;  %s706_s3 = inlined_call_operand.hbm [shape: f32[2,1,128], index: 3, kind: output, shape index: {}]  }
   0x1   :  { %10 = vsyncpa [#allocation3 + $0x1], 0 }
   0x2   :  { %11 = vsyncpa [#allocation6], 0 }
   0x3   :  { %12 = vsyncpa [#allocation4], 0 }
   0x4   :  { %14 = vsyncpa [#allocation4 + $0x1], 0  ;;  %s561_s12 = smov 0   ;;  %s563_s13 = smov 0  }
   0x5   :  { %s565_s14 = smov 0   ;;  %s567_s15 = smov 0  }
   0x6 LB: > { %s582_s16 = sadd.s32 4294967295, %s538_s15   ;;  %s337_s17 = sadd.s32 4294967294, %s538_s15   ;;  %s538_s15 = sphi %s567_s15, %s716_s15   ;;  %s534_s14 = sphi %s565_s14, %s715_s14   ;;  %s530_s13 = sphi %s563_s13, %s714_s13   ;;  %s526_s12 = sphi %s561_s12, %s713_s12  }
   0x7   : > { %p40_p0 = scmp.ne.s32.totalorder %s530_s13, %s526_s12  ;;  %p41_p1 = scmp.eq.s32.totalorder %s582_s16, 0 }
   0x8   : > { %p106_p2 = scmp.eq.s32.totalorder %s582_s16, 1  ;;  %p112_p3 = scmp.eq.s32.totalorder %s337_s17, 1 }
   0x9   : > { %p591_p4 = por %p41_p1, %p40_p0  ;;  %p338_p5 = scmp.ge.s32.totalorder %s538_s15, 1 }
   0xa   : > { %p596_p6 = por %p112_p3, %p40_p0  ;;  %p119_p7 = scmp.lt.s32.totalorder %s538_s15, 3 }
   0xb   : > { %s131_s22 = sshll.u32 %s704_s1, 4  ;;  %s540_s24 = smov [#allocation5]   ;;  %s132_s22 = int_to_ptr.hbm [resolvable:$true] %s131_s22 }
   0xc   : > { %p604_p8 = pnand %p338_p5, %p119_p7  ;;  %s133_s25 = sshll.u32 %s540_s24, 4  ;;  %s134_s25 = int_to_ptr.vmem [resolvable:$true] %s133_s25 }
   0xd   : > { %s614_s26 = sadd.s32 1, %s538_s15   ;;  %s27_s27 = sadd.s32 1, %s534_s14 }
   0xe   : > { %p359_p10 = pneg %p604_p8  ;;  %s24_s28 = ssub.s32 %s538_s15, %s614_s26 }
   0xf   : > { %p25_p12 = scmp.eq.s32.totalorder %s24_s28, 0  ;;  %p34_p13 = scmp.ne.s32.totalorder %s534_s14, %s530_s13 }
  0x10   : > { %p360_p11 = pnand %p359_p10, %p41_p1  ;;  %p35_p0 = scmp.eq.s32.totalorder %s538_s15, 0 }
  0x11   : > { %s623_s29 = scalar_select %p25_p12, %s534_s14, %s27_s27  }
  0x12   : > { %362 = dma.hbm_to_vmem [thread:$0]  (!%p360_p11), %s132_s22, 32, %s134_s25, [#allocation6]  }
  0x13   : > { %p627_p3 = por %p106_p2, %p34_p13  ;;  %p372_p5 = scmp.lt.s32.totalorder %s538_s15, 2 }
  0x14   : > { %s147_s4 = sand.u32 1, %s534_s14   ;;  %s350_s5 = sshll.u32 %s538_s15, 3 }
  0x15   : > { %p36_p7 = por %p35_p0, %p34_p13  ;;  %s341_s6 = sshll.u32 %s147_s4, 3 }
  0x16   : > { %s156_s9 = scalar_lea.hbm %s703_s0, %s350_s5  ;;  %s151_s11 = scalar_lea.vmem [#allocation2], %s341_s6 }
  0x17   : > { %s158_s10 = sshll.u32 %s156_s9, 4  ;;  %s160_s17 = sshll.u32 %s151_s11, 4  ;;  %s159_s10 = int_to_ptr.hbm [resolvable:$true] %s158_s10  ;;  %s161_s17 = int_to_ptr.vmem [resolvable:$true] %s160_s17 }
  0x18   : > { %p637_p10 = pnand %p372_p5, %p36_p7  ;;  %s148_s21 = scalar_lea.sflag [#allocation3], %s147_s4 }
  0x19   : > { %s438_s22 = sshra.s32 %s159_s10, 4  ;;  %s445_s28 = scalar_lea.hbm %s703_s0, 16  ;;  %s439_s22 = int_to_ptr.hbm [resolvable:$true] %s438_s22 }
  0x1a   : > { %s440_s24 = scalar_lea.hbm %s439_s22, 8  ;;  %p442_p11 = pneg %p637_p10 }
  0x1b   : > { %p441_p2 = scmp.ne.s32.totalorder %s439_s22, %s440_s24  ;;  %p446_p0 = scmp.lt.s32.totalorder %s439_s22, %s703_s0 }
  0x1c   : > { %p447_p5 = scmp.lt.s32.totalorder %s445_s28, %s440_s24 }
  0x1d   : > { %p443_p12 = pnand %p442_p11, %p441_p2 }
  0x1e   : > { %p448_p7 = por %p447_p5, %p446_p0 }
  0x1f   : > { %p444_p13 = pneg %p443_p12 }
  0x21   : > { %p449_p9 = pnand %p448_p7, %p444_p13 }
  0x23   : > { %452 = shalt.err (!%p449_p9)
}
  0x24   : > { %366 = dma.hbm_to_vmem [thread:$0]  (!%p637_p10), %s159_s10, 128, %s161_s17, %s148_s21  }
  0x25   : > { %169 = sbr.rel (%p604_p8) target bundleno = 315 (0x13b), region = 32  ;;  %s654_s4 = sand.u32 (!%p604_p8), 1, %s530_s13  }
  0x26   : > { %s345_s7 = sshll.u32 (!%p604_p8), %s654_s4, 3  ;;  %s172_s8 = scalar_lea.sflag (!%p604_p8), [#allocation3], %s654_s4 }
  0x27   : > { %s175_s9 = scalar_lea.vmem (!%p604_p8), [#allocation2], %s345_s7 }
  0x2a   : > { %513 = dma.done.wait (%p591_p4), %s172_s8, 128  }
  0x2b   : > { %515 = vsyncadd (%p591_p4), %s172_s8, 4294967168 }
  0x2c   : > { %517 = dma.done.wait (%p41_p1), [#allocation6], 32  }
  0x2d   : > { %519 = vsyncadd (%p41_p1), [#allocation6], 4294967264  ;;  %v204_v0 = vld [vmem:[%s175_s9] sm:$0xff]  ;;  %vm211_vm0 = vcmask 1043456   ;;  %v218_v6 = vld [vmem:[#allocation5] sm:$0x3]  ;;  %v222_v8 = vlaneseq  ;;  %s257_s10 = scalar_lea.hbm %s706_s3, %s582_s16 }
  0x2e   : > { %206 = vst [vmem:[#allocation1] ss:$2 sm:$0xff] %v204_v0  ;;  %vm230_vm1 = vcmask 1041408   ;;  %vm226_vm2 = vcmask 31744   ;;  %v219_v15 = vld [vmem:[%s705_s2] sm:$0x1] }
  0x2f   : > { %v232_v7 = vsel %vm230_vm1, %v218_v6, 0  ;;  %v223_v11 = vand.u32 127, %v222_v8  ;;  %s202_s20 = scalar_lea.vmem [#allocation7], %s654_s4  ;;  %s261_s22 = sshll.u32 %s257_s10, 4  ;;  %s262_s22 = int_to_ptr.hbm [resolvable:$true] %s261_s22 }
  0x30   : > { %241 = vmatpush.bf16.msra.mxu0 %v232_v7  ;;  %s259_s21 = sshll.u32 %s202_s20, 4  ;;  %s249_s24 = scalar_lea.sflag [#allocation4], %s654_s4  ;;  %s260_s21 = int_to_ptr.vmem [resolvable:$true] %s259_s21 }
  0x31   : > { %s482_s25 = sshra.s32 %s262_s22, 4  ;;  %s488_s5 = scalar_lea.hbm %s706_s3, 2  ;;  %s483_s25 = int_to_ptr.hbm [resolvable:$true] %s482_s25 }
  0x32   : > { %s484_s27 = scalar_lea.hbm %s483_s25, 1  ;;  %p489_p9 = scmp.lt.s32.totalorder %s483_s25, %s706_s3 }
  0x33   : > { %p485_p1 = scmp.ne.s32.totalorder %s483_s25, %s484_s27  ;;  %p490_p10 = scmp.lt.s32.totalorder %s488_s5, %s484_s27 }
  0x35   : > { %v207_v1 = vld.sshfl [vmem:[#allocation1] sm:$0xff pattern:$0x75316420]  ;;  %v208_v2 = vld.sshfl [vmem:[#allocation1 + $0x8] sm:$0xff pattern:$0x75316420]  ;;  %p486_p4 = pnand %p485_p1, %p627_p3  ;;  %p491_p2 = por %p490_p10, %p489_p9 }
  0x36   : > { %v212_v3 = vsel %vm211_vm0, %v207_v1, 0.0  ;;  %v213_v4 = vsel %vm211_vm0, %v208_v2, 0.0 }
  0x37   : > { %v214_v5 = vadd.f32 %v213_v4, %v212_v3  ;;  %p487_p8 = pneg %p486_p4 }
  0x39   : > { %215 = vadd.xlane.f32.xlu0 %v214_v5  ;;  %p492_p11 = pnand %p491_p2, %p487_p8 }
  0xac   : > { %v216_v9 = vpop.xlane.xlu0 %215 }
  0xad   : > { %v217_v10 = vpack.c.bf16 %v216_v9, %v216_v9 }
  0xaf   : > { %v221_v12 = vunpack.c.l.b16 %v217_v10 }
  0xb1   : > { %v224_v13 = vperm.slane %v221_v12, %v223_v11 }
  0xb3   : > { %v225_v14 = vpack.c.b16 %v224_v13, %v224_v13 }
  0xb5   : > { %347 = vmatmul.msk.bf16.vlgmr.msra.gmra.mxu0 %vm226_vm2, %v225_v14 }
 0x132   : > { %v243_v16 = vpop.f32.mrf.mxu0 }
 0x133   : > { %v244_v17 = vadd.f32 %v243_v16, %v219_v15 }
 0x135   : > { %247 = vst [vmem:[%s202_s20] sm:$0x1] %v244_v17 }
 0x136   : > { %495 = shalt.err (!%p492_p11)
}
 0x137   : > { %357 = dma.vmem_to_hbm [thread:$0]  (%p627_p3), %s260_s21, 16, %s262_s22, %s249_s24  }
 0x13a   : > { %v245_v18 = vpop.f32.mrf.mxu0 }
 0x13b PF: > { %s273_s4 = sand.u32 1, %s526_s12   ;;  %p712_p12 = scmp.ge.s32.totalorder %s538_s15, 2 }
 0x13c   : > { %s274_s8 = scalar_lea.sflag [#allocation4], %s273_s4 }
 0x13d   : > { %p368_p13 = pnand %p712_p12, %p596_p6 }
 0x13f   : > { %p369_p0 = pneg %p368_p13 }
 0x141   : > { %521 = dma.done.wait (%p369_p0), %s274_s8, 16  }
 0x142   : > { %523 = vsyncadd (%p369_p0), %s274_s8, 4294967280  ;;  %p17_p5 = scmp.ge.s32.totalorder %s614_s26, 4   ;;  %s713_s12 = smov %s530_s13 }
 0x143   : > { %s714_s13 = smov %s534_s14  ;;  %s715_s14 = smov %s623_s29 }
 0x144   : > { %s716_s15 = smov %s614_s26  ;;  %19 = sbr.rel (!%p17_p5) target bundleno = 6 (0x6), region = 81 }
 0x149   :  { %279 = vsyncpa [#allocation3], 1 }
 0x14a   :  { %281 = vsyncpa [#allocation3 + $0x1], 1 }
 0x14b   :  { %282 = vsyncpa [#allocation6], 1 }
 0x14c   :  { %283 = vsyncpa [#allocation4], 1 }
 0x14d   :  { %285 = vsyncpa [#allocation4 + $0x1], 1 }

</bundles_post_ra>
